<compile_context>
chip_gen: v6e
topology: v6e:2x2x1
jax: 0.10.0
libtpu: 0.0.40
codegen_flags: <defaults>
</compile_context>

<pallas_src>
import functools
import math

import jax
import jax.numpy as jnp
from jax.experimental import pallas as pl
from jax.experimental.pallas import tpu as pltpu


def _round_up(x, m):
    return ((x + m - 1) // m) * m


def _choose_pack(p, unit):
    """Smallest points-per-row packing so that unit*pack is a multiple of 128
    lanes, constrained to divide P and keep P/pack a multiple of 8 sublanes."""
    pack = 128 // math.gcd(128, unit)
    while pack > 1 and (p % pack != 0 or (p // pack) % 8 != 0):
        pack //= 2
    return max(1, pack)


def _pfn_kernel(x_ref, w_ref, b_ref, *out_refs, mode, pack, c_lin):
    # x_ref: (TN, rows, pack*Cin)  -- rows = P / pack, `pack` points per row
    # w_ref: (pack*Cin, pack*Clin) -- BN-scale-folded weight, block-diagonal
    # b_ref: (1, pack*Clin)        -- folded BN bias, tiled over the pack groups
    # out_refs:
    #   mode == "last":   [(TN, Clin)]
    #   mode == "split":  [(TN, rows, pack*Clin), (TN, Clin)]
    #   mode == "concat": [(TN, rows, pack*2*Clin)]
    x = x_ref[...]
    tn, rows, pcin = x.shape
    pcl = pack * c_lin

    # One 2-D MXU matmul over all points in the tile.  Merging (TN, rows) into
    # the sublane axis is layout-trivial (rows is a multiple of 8, minor dim
    # unchanged).  The block-diagonal weight keeps the result in the packed
    # lane layout, so no cross-lane relayout is ever needed.
    y = jnp.dot(x.reshape(tn * rows, pcin), w_ref[...],
                preferred_element_type=jnp.float32)
    y = jnp.maximum(y + b_ref[...], 0.0)          # folded BN + ReLU (f32, VPU)
    y3 = y.reshape(tn, rows, pcl)                 # (TN, rows, pack*Clin)

    # Per-point lane groups (static lane slices) and the per-pillar max.
    pieces = [y3[:, :, j * c_lin:(j + 1) * c_lin] for j in range(pack)]
    m = pieces[0]
    for q in pieces[1:]:
        m = jnp.maximum(m, q)                     # max across the pack groups
    ymax = jnp.max(m, axis=1)                     # (TN, Clin), max over points

    if mode == "last":
        out_refs[0][...] = ymax.astype(out_refs[0].dtype)
    elif mode == "split":
        # No redundant broadcast of the max: write y and ymax separately.
        out_refs[0][...] = y3.astype(out_refs[0].dtype)
        out_refs[1][...] = ymax.astype(out_refs[1].dtype)
    else:  # "concat" -- PyTorch-equivalent concatenated output.
        ymax_b = jnp.broadcast_to(ymax[:, None, :], (tn, rows, c_lin))
        parts = []
        for piece in pieces:                       # interleave [y_j, ymax] per point
            parts.append(piece)
            parts.append(ymax_b)
        full = jnp.concatenate(parts, axis=-1)     # (TN, rows, pack*2*Clin), lane-dense
        out_refs[0][...] = full.astype(out_refs[0].dtype)


def pfn_layer(inputs, weight_t, scale, bias, *, last_layer=False,
              split_outputs=False, tile_n=512, out_dtype=None,
              vmem_limit_bytes=48 * 1024 * 1024):
    """Pallas PFNLayer forward.

    inputs:   (N, P, Cin)  float32  (P should be a multiple of 8; PillarVFE uses 32)
    weight_t: (Cin, Clin)  float32  -- nn.Linear weight transposed
    scale:    (1, Clin) or (Clin,)  -- folded BN scale (ones if use_norm=False)
    bias:     (1, Clin) or (Clin,)  -- folded BN bias  (linear bias if use_norm=False)
    returns:
      last_layer:            (N, 1, Clin)
      split_outputs:         ((N, P, Clin), (N, 1, Clin))   -- y, ymax (no concat traffic)
      default (PyTorch-like): (N, P, 2*Clin)
    out_dtype: pass jnp.bfloat16 to halve the dominant HBM store stream.
    """
    n, p, cin = inputs.shape
    c_lin = weight_t.shape[1]
    out_dtype = inputs.dtype if out_dtype is None else out_dtype

    mode = "last" if last_layer else ("split" if split_outputs else "concat")
    unit = c_lin if mode in ("last", "split") else 2 * c_lin
    pack = _choose_pack(p, unit)
    rows = p // pack
    pcin = pack * cin
    pcl = pack * c_lin

    # Tile over pillars; keep >= 2 tiles so v7x's two TensorCores both get work.
    tile_n = max(8, min(tile_n, n))
    num_tiles = pl.cdiv(n, tile_n)
    if num_tiles == 1 and n >= 16:
        num_tiles = 2
    tile_n = _round_up(pl.cdiv(n, num_tiles), 8)
    n_pad = num_tiles * tile_n

    x = inputs
    if n_pad != n:
        # Padded pillars produce ReLU(bias); the wrapper slices them off below.
        x = jnp.pad(x, ((0, n_pad - n), (0, 0), (0, 0)))
    # Free row-major reshape: `pack` consecutive points per row.
    x = x.reshape(n_pad, rows, pcin)

    # Fold the BN scale into the weight; block-diagonalize over the pack groups.
    w_scaled = weight_t * scale.reshape(1, c_lin)
    w_bd = jnp.kron(jnp.eye(pack, dtype=w_scaled.dtype), w_scaled) if pack > 1 else w_scaled
    bias_p = jnp.tile(bias.reshape(1, c_lin), (1, pack))

    in_specs = [
        pl.BlockSpec((tile_n, rows, pcin), lambda i: (i, 0, 0)),
        pl.BlockSpec((pcin, pcl), lambda i: (0, 0)),
        pl.BlockSpec((1, pcl), lambda i: (0, 0)),
    ]

    if mode == "last":
        out_shape = jax.ShapeDtypeStruct((n_pad, c_lin), out_dtype)
        out_specs = pl.BlockSpec((tile_n, c_lin), lambda i: (i, 0))
    elif mode == "split":
        out_shape = (jax.ShapeDtypeStruct((n_pad, rows, pcl), out_dtype),
                     jax.ShapeDtypeStruct((n_pad, c_lin), out_dtype))
        out_specs = [pl.BlockSpec((tile_n, rows, pcl), lambda i: (i, 0, 0)),
                     pl.BlockSpec((tile_n, c_lin), lambda i: (i, 0))]
    else:  # concat
        out_shape = jax.ShapeDtypeStruct((n_pad, rows, pack * 2 * c_lin), out_dtype)
        out_specs = pl.BlockSpec((tile_n, rows, pack * 2 * c_lin), lambda i: (i, 0, 0))

    kernel = functools.partial(_pfn_kernel, mode=mode, pack=pack, c_lin=c_lin)

    out = pl.pallas_call(
        kernel,
        out_shape=out_shape,
        grid_spec=pl.GridSpec(
            grid=(num_tiles,),
            in_specs=in_specs,
            out_specs=out_specs,
        ),
        compiler_params=pltpu.CompilerParams(
            dimension_semantics=("parallel",),
            vmem_limit_bytes=vmem_limit_bytes,
        ),
    )(x, w_bd, bias_p)

    # Undo padding / packing (free reshapes: same row-major bytes).
    if mode == "last":
        return out[:n].reshape(n, 1, c_lin)
    if mode == "split":
        y_out, max_out = out
        return (y_out[:n].reshape(n, p, c_lin),
                max_out[:n].reshape(n, 1, c_lin))
    return out[:n].reshape(n, p, 2 * c_lin)


def _reference(inputs, weight_t, scale, bias, last_layer=False):
    x = inputs @ weight_t                 # (N, P, Clin)
    x = x * scale[None] + bias[None]      # folded BN (inference)
    x = jnp.maximum(x, 0.0)               # ReLU
    x_max = jnp.max(x, axis=1, keepdims=True)
    if last_layer:
        return x_max
    x_rep = jnp.broadcast_to(x_max, x.shape)
    return jnp.concatenate([x, x_rep], axis=2)


if __name__ == "__main__":
    # PFNLayer(in_channels=10, out_channels=64, use_norm=True)
    #   -> linear: 10 -> 32 (out_channels // 2); concat output channels = 64.
    N, P, C_IN, C_OUT = 20, 32, 10, 64     # small demo shapes
    C_HALF = C_OUT // 2
    EPS = 1e-3

    key = jax.random.PRNGKey(0)
    k_x, k_w, k_g, k_b, k_m, k_v = jax.random.split(key, 6)

    inputs = jax.random.normal(k_x, (N, P, C_IN), dtype=jnp.float32)

    # nn.Linear(in, out, bias=False): weight shape (out, in).  Store transposed.
    lin_w = jax.random.normal(k_w, (C_HALF, C_IN), dtype=jnp.float32) * 0.1
    weight_t = lin_w.T  # (C_IN, C_HALF)

    # BatchNorm1d(C_HALF, eps=0.001) inference parameters.
    bn_gamma = 1.0 + 0.1 * jax.random.normal(k_g, (C_HALF,), dtype=jnp.float32)
    bn_beta = 0.1 * jax.random.normal(k_b, (C_HALF,), dtype=jnp.float32)
    bn_mean = 0.05 * jax.random.normal(k_m, (C_HALF,), dtype=jnp.float32)
    bn_var = jnp.abs(1.0 + 0.1 * jax.random.normal(k_v, (C_HALF,), dtype=jnp.float32))

    scale_vec = bn_gamma / jnp.sqrt(bn_var + EPS)
    bias_vec = bn_beta - bn_mean * scale_vec
    scale = scale_vec.reshape(1, C_HALF)
    bias = bias_vec.reshape(1, C_HALF)

    ref = _reference(inputs, weight_t, scale, bias, last_layer=False)

    # 1) Intermediate PFN layer (concat output), lane-dense packed layout,
    #    default tiling (forces 2 tiles -> exercises the padding path too).
    out = pfn_layer(inputs, weight_t, scale, bias, last_layer=False)
    out = jax.block_until_ready(out)
    assert out.shape == (N, P, C_OUT), out.shape
    assert jnp.allclose(out, ref, atol=1e-4, rtol=1e-4), "mismatch vs reference"

    # 2) Small explicit tile: different padding / multi-tile configuration.
    out_small = pfn_layer(inputs, weight_t, scale, bias, last_layer=False, tile_n=8)
    out_small = jax.block_until_ready(out_small)
    assert jnp.allclose(out_small, ref, atol=1e-4, rtol=1e-4), "padding path mismatch"

    # 3) Last PFN layer (max-only output, 2-D lane layout internally).
    ref_last = _reference(inputs, weight_t, scale, bias, last_layer=True)
    out_last = pfn_layer(inputs, weight_t, scale, bias, last_layer=True)
    out_last = jax.block_until_ready(out_last)
    assert out_last.shape == (N, 1, C_HALF), out_last.shape
    assert jnp.allclose(out_last, ref_last, atol=1e-4, rtol=1e-4), "last-layer mismatch"

    # 4) Split-output mode (review item 1): y + ymax without the redundant
    #    broadcast write; rebuild the concat here only to check correctness.
    y_feat, y_max = pfn_layer(inputs, weight_t, scale, bias, split_outputs=True)
    y_feat = jax.block_until_ready(y_feat)
    assert y_feat.shape == (N, P, C_HALF) and y_max.shape == (N, 1, C_HALF)
    rebuilt = jnp.concatenate([y_feat, jnp.broadcast_to(y_max, y_feat.shape)], axis=2)
    assert jnp.allclose(rebuilt, ref, atol=1e-4, rtol=1e-4), "split-output mismatch"

    # 5) bf16 output store (review item 2) -- looser tolerance.
    out_bf16 = pfn_layer(inputs, weight_t, scale, bias, out_dtype=jnp.bfloat16)
    out_bf16 = jax.block_until_ready(out_bf16)
    assert jnp.allclose(out_bf16.astype(jnp.float32), ref, atol=3e-2, rtol=3e-2), \
        "bf16 output path mismatch"

    print("KERNEL_OK")
</pallas_src>

<mosaic_0001>
module attributes {stable_mosaic.version = 11 : i64} {
  func.func @_pfn_kernel(%arg0: i32, %arg1: memref<16x16x20xf32, #tpu.memory_space<vmem>>, %arg2: memref<20x64xf32, #tpu.memory_space<vmem>>, %arg3: memref<1x64xf32, #tpu.memory_space<vmem>>, %arg4: memref<16x16x128xf32, #tpu.memory_space<vmem>>) attributes {dimension_semantics = [#tpu.dimension_semantics<parallel>], iteration_bounds = array<i64: 2>, scalar_prefetch = 0 : i64, scratch_operands = 0 : i64, tpu.core_type = #tpu.core_type<tc>, window_params = [{transform_indices = @transform_0, window_bounds = array<i64: 16, 16, 20>}, {pipeline_mode = #tpu.pipeline_mode<synchronous>, transform_indices = @transform_1, window_bounds = array<i64: 20, 64>}, {pipeline_mode = #tpu.pipeline_mode<synchronous>, transform_indices = @transform_2, window_bounds = array<i64: 1, 64>}, {transform_indices = @transform_3, window_bounds = array<i64: 16, 16, 128>}]} {
    %c0 = arith.constant 0 : index
    %c0_0 = arith.constant 0 : index
    %c0_1 = arith.constant 0 : index
    %0 = vector.load %arg1[%c0, %c0_0, %c0_1] : memref<16x16x20xf32, #tpu.memory_space<vmem>>, vector<16x16x20xf32>
    %1 = vector.shape_cast %0 : vector<16x16x20xf32> to vector<256x20xf32>
    %c0_2 = arith.constant 0 : index
    %c0_3 = arith.constant 0 : index
    %2 = vector.load %arg2[%c0_2, %c0_3] : memref<20x64xf32, #tpu.memory_space<vmem>>, vector<20x64xf32>
    %cst = arith.constant dense<0.000000e+00> : vector<256x64xf32>
    %3 = tpu.matmul %1, %2, %cst {dimension_numbers = #tpu.dot_dimension_numbers<[1], [0], [0], [1], [0, 0, 1, 1], [], []>} : vector<256x20xf32>, vector<20x64xf32>, vector<256x64xf32> -> vector<256x64xf32>
    %c0_4 = arith.constant 0 : index
    %c0_5 = arith.constant 0 : index
    %4 = vector.load %arg3[%c0_4, %c0_5] : memref<1x64xf32, #tpu.memory_space<vmem>>, vector<1x64xf32>
    %5 = vector.broadcast %4 : vector<1x64xf32> to vector<256x64xf32>
    %6 = arith.addf %3, %5 : vector<256x64xf32>
    %cst_6 = arith.constant 0.000000e+00 : f32
    %7 = vector.broadcast %cst_6 : f32 to vector<256x64xf32>
    %8 = arith.maximumf %6, %7 : vector<256x64xf32>
    %9 = vector.shape_cast %8 : vector<256x64xf32> to vector<16x16x64xf32>
    %10 = vector.extract_strided_slice %9 {offsets = [0, 0, 0], sizes = [16, 16, 32], strides = [1, 1, 1]} : vector<16x16x64xf32> to vector<16x16x32xf32>
    %11 = vector.extract_strided_slice %9 {offsets = [0, 0, 32], sizes = [16, 16, 32], strides = [1, 1, 1]} : vector<16x16x64xf32> to vector<16x16x32xf32>
    %12 = arith.maximumf %10, %11 : vector<16x16x32xf32>
    %cst_7 = arith.constant dense<0xFF800000> : vector<16x32xf32>
    %13 = vector.multi_reduction <maximumf>, %12, %cst_7 [1] : vector<16x16x32xf32> to vector<16x32xf32>
    %14 = vector.shape_cast %13 : vector<16x32xf32> to vector<16x1x32xf32>
    %15 = vector.shape_cast %14 : vector<16x1x32xf32> to vector<16x1x32xf32>
    %16 = vector.broadcast %15 : vector<16x1x32xf32> to vector<16x16x32xf32>
    %17 = tpu.concatenate %10, %16, %11, %16 in 2 : vector<16x16x32xf32>, vector<16x16x32xf32>, vector<16x16x32xf32>, vector<16x16x32xf32> -> vector<16x16x128xf32>
    %c0_8 = arith.constant 0 : index
    %c0_9 = arith.constant 0 : index
    %c0_10 = arith.constant 0 : index
    %18 = vector.load %arg4[%c0_8, %c0_9, %c0_10] : memref<16x16x128xf32, #tpu.memory_space<vmem>>, vector<16x16x128xf32>
    tpu.vector_store %arg4[%c0_8, %c0_9, %c0_10], %17 {strides = array<i32>} : memref<16x16x128xf32, #tpu.memory_space<vmem>>, vector<16x16x128xf32>,
    return
  }
  func.func @transform_0(%arg0: i32) -> (i32, i32, i32) {
    %c0_i32 = arith.constant 0 : i32
    %c0_i32_0 = arith.constant 0 : i32
    %c0_i32_1 = arith.constant 0 : i32
    return %arg0, %c0_i32, %c0_i32_0 : i32, i32, i32
  }
  func.func @transform_1(%arg0: i32) -> (i32, i32) {
    %c0_i32 = arith.constant 0 : i32
    %c0_i32_0 = arith.constant 0 : i32
    %c0_i32_1 = arith.constant 0 : i32
    return %c0_i32, %c0_i32_0 : i32, i32
  }
  func.func @transform_2(%arg0: i32) -> (i32, i32) {
    %c0_i32 = arith.constant 0 : i32
    %c0_i32_0 = arith.constant 0 : i32
    %c0_i32_1 = arith.constant 0 : i32
    return %c0_i32, %c0_i32_0 : i32, i32
  }
  func.func @transform_3(%arg0: i32) -> (i32, i32, i32) {
    %c0_i32 = arith.constant 0 : i32
    %c0_i32_0 = arith.constant 0 : i32
    %c0_i32_1 = arith.constant 0 : i32
    return %arg0, %c0_i32, %c0_i32_0 : i32, i32, i32
  }
}

</mosaic_0001>

<bundles_post_ra>
// kernel: tpu_custom_call.1
= control target key start
LH: loop header
LB: loop body
LE: loop exit
PB: predicated region body
PF: predicated region fallthrough
CT: control target
= control target key end

     0   :  { %8 = vsyncpa [#allocation3], 0  ;;  %s2335_s0 = inlined_call_operand.vmem [shape: f32[32,16,20], index: 0, kind: input, shape index: {}]   ;;  %s2336_s1 = inlined_call_operand.vmem [shape: f32[20,64], index: 1, kind: input, shape index: {}]   ;;  %s2337_s2 = inlined_call_operand.vmem [shape: f32[1,64], index: 2, kind: input, shape index: {}]   ;;  %s2338_s3 = inlined_call_operand.hbm [shape: f32[32,16,128], index: 3, kind: output, shape index: {}]  }
   0x1   :  { %10 = vsyncpa [#allocation3 + $0x1], 0  ;;  %s1571_s12 = smov 0   ;;  %s1573_s13 = smov 0  }
   0x2   :  { %s1575_s14 = smov 0   ;;  %s1577_s15 = smov 0  }
   0x3 LB: > { %s1592_s16 = sadd.s32 4294967295, %s1544_s15   ;;  %s1295_s17 = sadd.s32 4294967294, %s1544_s15   ;;  %s1544_s15 = sphi %s1577_s15, %s2375_s15   ;;  %s1540_s14 = sphi %s1575_s14, %s2374_s14   ;;  %s1536_s13 = sphi %s1573_s13, %s2373_s13   ;;  %s1532_s12 = sphi %s1571_s12, %s2372_s12  }
   0x4   : > { %s1596_s18 = sadd.s32 1, %s1544_s15   ;;  %s91_s19 = sadd.s32 1, %s1540_s14 }
   0x5   : > { %s88_s20 = ssub.s32 %s1544_s15, %s1596_s18  ;;  %p101_p0 = scmp.ne.s32.totalorder %s1540_s14, %s1536_s13 }
   0x6   : > { %p89_p1 = scmp.eq.s32.totalorder %s88_s20, 0  ;;  %p102_p2 = scmp.eq.s32.totalorder %s1592_s16, 1 }
   0x7   : > { %p107_p3 = scmp.ne.s32.totalorder %s1536_s13, %s1532_s12  ;;  %p108_p4 = scmp.eq.s32.totalorder %s1295_s17, 1 }
   0x8   : > { %s1607_s21 = scalar_select %p89_p1, %s1540_s14, %s91_s19  }
   0x9   : > { %p1609_p5 = por %p102_p2, %p101_p0  ;;  %p1613_p6 = por %p108_p4, %p107_p3 }
   0xa   : > { %p1298_p7 = scmp.ge.s32.totalorder %s1544_s15, 1  ;;  %p142_p8 = scmp.lt.s32.totalorder %s1544_s15, 3 }
   0xc   : > { %p143_p9 = pnand %p1298_p7, %p142_p8 }
   0xe   : > { %146 = sbr.rel (%p143_p9) target bundleno = 603 (0x25b), region = 32 }
  0x13   : > { %v209_v0 = vld [vmem:[%s2336_s1 + $0x10] sm:$0xf]  ;;  %vm314_vm0 = vcmask 1043456   ;;  %v208_v1 = vld [vmem:[%s2336_s1 + $0x8] sm:$0xff]  ;;  %s1300_s28 = sshll.u32 %s1592_s16, 4  ;;  %v207_v2 = vld [vmem:[%s2336_s1] sm:$0xff] }
  0x14   : > { %1381 = vmatprep.subr.msk.mxu0 %vm314_vm0, %v209_v0  ;;  %1435 = vmatprep.subr.msk.mxu1 %vm314_vm0, %v209_v0  ;;  %p168_p10 = scmp.lt.s32.totalorder %s1300_s28, 31  ;;  %vm217_vm1 = vcmask 162816   ;;  %v1701_v35 = vld [vmem:[%s2337_s2] ss:$0 sm:$0xff]  ;;  %s1546_s10 = smov 96   ;;  %vm735_vm2 = vcmask 261120  }
  0x15   : > { %1382 = vmatpush3.msk.msra.mxu0 %vm314_vm0, %v209_v0  ;;  %1438 = vmatpush3.msk.msra.mxu1 %vm314_vm0, %v209_v0  ;;  %s1547_s11 = smov 32   ;;  %s164_s17 = sand.u32 1, %s1536_s13   ;;  %vm1120_vm3 = vcmask 523264   ;;  %vm1153_vm4 = vcmask 785408  }
  0x16   : > { %1383 = vmatprep.subr.mxu0 %v208_v1  ;;  %1436 = vmatprep.subr.mxu1 %v208_v1  ;;  %s2377_s28 = smov (!%p168_p10, %s1300_s28), 31  ;;  %s1299_s19 = sshll.u32 %s164_s17, 8 }
  0x17   : > { %1384 = vmatpush3.msra.mxu0 %v208_v1  ;;  %1439 = vmatpush3.msra.mxu1 %v208_v1  ;;  %s1343_s4 = sshll.u32 %s2377_s28, 4  ;;  %s2100_s20 = scalar_lea.vmem [#allocation2], %s1299_s19 }
  0x18   : > { %1385 = vmatprep.subr.mxu0 %v207_v2  ;;  %1437 = vmatprep.subr.mxu1 %v207_v2  ;;  %s1632_s7 = scalar_lea.vmem %s2335_s0, %s1343_s4  ;;  %s1345_s24 = sshll.u32 %s1592_s16, 12 }
  0x19   : > { %1386 = vmatpush3.msra.mxu0 %v207_v2  ;;  %1440 = vmatpush3.msra.mxu1 %v207_v2  ;;  %v175_v3 = vld [vmem:[%s1632_s7] sm:$0xff]  ;;  %v176_v5 = vld [vmem:[%s1632_s7 + $0x8] sm:$0xff]  ;;  %v177_v7 = vld [vmem:[%s1632_s7 + $0x10] sm:$0xff]  ;;  %s1233_s25 = sshll.u32 %s2100_s20, 4  ;;  %s2281_s16 = scalar_lea.hbm %s2338_s3, %s1345_s24  ;;  %s2283_s25 = int_to_ptr.vmem [resolvable:$true] %s1233_s25 }
  0x1a   : > { %v191_v4 = vld [vmem:[%s1632_s7 + $0x80] sm:$0xff]  ;;  %1387 = vmatprep.mubr.msk.f32.mxu0 %vm217_vm1, %v175_v3  ;;  %v192_v6 = vld [vmem:[%s1632_s7 + $0x88] sm:$0xff]  ;;  %v193_v8 = vld [vmem:[%s1632_s7 + $0x90] sm:$0xff]  ;;  %s2295_s28 = scalar_lea.sflag [#allocation3], %s164_s17  ;;  %s1484_s29 = scalar_lea.vmem %s2283_s25, 4096 }
  0x1b   : > { %1411 = vmatprep.mubr.msk.f32.mxu1 %vm217_vm1, %v191_v4  ;;  %1388 = vmatmul.mubr.msk.f32.vlgmr.msra.gmra.mxu0 %vm217_vm1, %v176_v5  ;;  %v178_v9 = vld [vmem:[%s1632_s7 + $0x18] sm:$0xff]  ;;  %v179_v11 = vld [vmem:[%s1632_s7 + $0x20] sm:$0xff]  ;;  %v180_v13 = vld [vmem:[%s1632_s7 + $0x28] sm:$0xff]  ;;  %p1485_p11 = scmp.ne.s32.totalorder %s2283_s25, %s1484_s29  ;;  %s1548_s30 = smov [#allocation2]  }
  0x1c   : > { %1412 = vmatmul.mubr.msk.f32.vlgmr.msra.gmra.mxu1 %vm217_vm1, %v192_v6  ;;  %1390 = vmatprep.mubr.msk.f32.mxu0 %vm217_vm1, %v177_v7  ;;  %v194_v10 = vld [vmem:[%s1632_s7 + $0x98] sm:$0xff]  ;;  %v195_v12 = vld [vmem:[%s1632_s7 + $0xa0] sm:$0xff]  ;;  %v196_v14 = vld [vmem:[%s1632_s7 + $0xa8] sm:$0xff]  ;;  %s1488_s4 = sshll.u32 %s1548_s30, 4  ;;  %s1489_s4 = int_to_ptr.vmem [resolvable:$false] %s1488_s4 }
  0x1d   : > { %1414 = vmatprep.mubr.msk.f32.mxu1 %vm217_vm1, %v193_v8  ;;  %v181_v15 = vld [vmem:[%s1632_s7 + $0x30] sm:$0xff]  ;;  %v182_v17 = vld [vmem:[%s1632_s7 + $0x38] sm:$0xff]  ;;  %v183_v19 = vld [vmem:[%s1632_s7 + $0x40] sm:$0xff]  ;;  %p1486_p12 = pnand %p1485_p11, %p1609_p5  ;;  %s1490_s5 = scalar_lea.vmem %s1489_s4, 8192 }
  0x1e   : > { %v197_v16 = vld [vmem:[%s1632_s7 + $0xb0] sm:$0xff]  ;;  %v198_v18 = vld [vmem:[%s1632_s7 + $0xb8] sm:$0xff]  ;;  %v199_v20 = vld [vmem:[%s1632_s7 + $0xc0] sm:$0xff]  ;;  %p1491_p0 = scmp.lt.s32.totalorder %s2283_s25, %s1489_s4  ;;  %p1492_p1 = scmp.lt.s32.totalorder %s1490_s5, %s1484_s29 }
  0x1f   : > { %1391 = vmatmul.mubr.msk.f32.gmra.mxu0 %vm217_vm1, %v178_v9  ;;  %v184_v21 = vld [vmem:[%s1632_s7 + $0x48] sm:$0xff]  ;;  %v185_v23 = vld [vmem:[%s1632_s7 + $0x50] sm:$0xff]  ;;  %v186_v25 = vld [vmem:[%s1632_s7 + $0x58] sm:$0xff]  ;;  %p1487_p13 = pneg %p1486_p12 }
  0x20   : > { %1415 = vmatmul.mubr.msk.f32.gmra.mxu1 %vm217_vm1, %v194_v10  ;;  %1393 = vmatprep.mubr.msk.f32.mxu0 %vm217_vm1, %v179_v11  ;;  %v200_v22 = vld [vmem:[%s1632_s7 + $0xc8] sm:$0xff]  ;;  %v201_v24 = vld [vmem:[%s1632_s7 + $0xd0] sm:$0xff]  ;;  %v202_v26 = vld [vmem:[%s1632_s7 + $0xd8] sm:$0xff]  ;;  %p1493_p2 = por %p1492_p1, %p1491_p0 }
  0x21   : > { %1417 = vmatprep.mubr.msk.f32.mxu1 %vm217_vm1, %v195_v12  ;;  %v187_v27 = vld [vmem:[%s1632_s7 + $0x60] sm:$0xff]  ;;  %v188_v29 = vld [vmem:[%s1632_s7 + $0x68] sm:$0xff]  ;;  %v189_v31 = vld [vmem:[%s1632_s7 + $0x70] sm:$0xff] }
  0x22   : > { %v203_v28 = vld [vmem:[%s1632_s7 + $0xe0] sm:$0xff]  ;;  %v204_v30 = vld [vmem:[%s1632_s7 + $0xe8] sm:$0xff]  ;;  %v205_v32 = vld [vmem:[%s1632_s7 + $0xf0] sm:$0xff]  ;;  %p1494_p3 = pnand %p1493_p2, %p1487_p13 }
  0x23   : > { %1394 = vmatmul.mubr.msk.f32.gmra.mxu0 %vm217_vm1, %v180_v13  ;;  %v190_v33 = vld [vmem:[%s1632_s7 + $0x78] sm:$0xff] }
  0x24   : > { %1418 = vmatmul.mubr.msk.f32.gmra.mxu1 %vm217_vm1, %v196_v14  ;;  %1396 = vmatprep.mubr.msk.f32.mxu0 %vm217_vm1, %v181_v15  ;;  %v206_v34 = vld [vmem:[%s1632_s7 + $0xf8] sm:$0xff] }
  0x25   : > { %1420 = vmatprep.mubr.msk.f32.mxu1 %vm217_vm1, %v197_v16 }
  0x27   : > { %1397 = vmatmul.mubr.msk.f32.gmra.mxu0 %vm217_vm1, %v182_v17 }
  0x28   : > { %1421 = vmatmul.mubr.msk.f32.gmra.mxu1 %vm217_vm1, %v198_v18  ;;  %1399 = vmatprep.mubr.msk.f32.mxu0 %vm217_vm1, %v183_v19 }
  0x29   : > { %1423 = vmatprep.mubr.msk.f32.mxu1 %vm217_vm1, %v199_v20 }
  0x2b   : > { %1400 = vmatmul.mubr.msk.f32.gmra.mxu0 %vm217_vm1, %v184_v21 }
  0x2c   : > { %1424 = vmatmul.mubr.msk.f32.gmra.mxu1 %vm217_vm1, %v200_v22  ;;  %1402 = vmatprep.mubr.msk.f32.mxu0 %vm217_vm1, %v185_v23 }
  0x2d   : > { %1426 = vmatprep.mubr.msk.f32.mxu1 %vm217_vm1, %v201_v24 }
  0x2f   : > { %1403 = vmatmul.mubr.msk.f32.gmra.mxu0 %vm217_vm1, %v186_v25 }
  0x30   : > { %1427 = vmatmul.mubr.msk.f32.gmra.mxu1 %vm217_vm1, %v202_v26  ;;  %1405 = vmatprep.mubr.msk.f32.mxu0 %vm217_vm1, %v187_v27 }
  0x31   : > { %1429 = vmatprep.mubr.msk.f32.mxu1 %vm217_vm1, %v203_v28 }
  0x33   : > { %1406 = vmatmul.mubr.msk.f32.gmra.mxu0 %vm217_vm1, %v188_v29 }
  0x34   : > { %1430 = vmatmul.mubr.msk.f32.gmra.mxu1 %vm217_vm1, %v204_v30  ;;  %1408 = vmatprep.mubr.msk.f32.mxu0 %vm217_vm1, %v189_v31 }
  0x35   : > { %1432 = vmatprep.mubr.msk.f32.mxu1 %vm217_vm1, %v205_v32 }
  0x37   : > { %1409 = vmatmul.mubr.msk.f32.gmra.mxu0 %vm217_vm1, %v190_v33 }
  0x38   : > { %1433 = vmatmul.mubr.msk.f32.gmra.mxu1 %vm217_vm1, %v206_v34 }
  0xdb   : > { %v1389_v36 = vpop.f32.mrf.mxu0 }
  0xdc   : > { %v1413_v37 = vpop.f32.mrf.mxu1  ;;  %v390_v38 = vadd.f32 %v1389_v36, %v1701_v35 }
  0xdd   : > { %v470_v39 = vadd.f32 %v1413_v37, %v1701_v35  ;;  %v384_v40 = vpop.f32.mrf.mxu0 }
  0xde   : > { %v1705_v41 = vmax.f32 %v390_v38, 0.0  ;;  %v385_v43 = vadd.f32 %v1701_v35, %v384_v40  ;;  %v464_v44 = vpop.f32.mrf.mxu1 }
  0xdf   : > { %v1707_v42 = vmax.f32 %v470_v39, 0.0  ;;  %v465_v46 = vadd.f32 %v1701_v35, %v464_v44  ;;  %v1392_v47 = vpop.f32.mrf.mxu0 }
  0xe0   : > { %609 = vrot.lane.b32.xlu0 %v1705_v41, %s1546_s10  ;;  %v1714_v45 = vmax.f32 %v385_v43, 0.0  ;;  %v400_v48 = vadd.f32 %v1392_v47, %v1701_v35  ;;  %v1416_v50 = vpop.f32.mrf.mxu1 }
  0xe1   : > { %641 = vrot.lane.b32.xlu1 %v1707_v42, %s1546_s10  ;;  %v1722_v49 = vmax.f32 %v465_v46, 0.0  ;;  %v480_v52 = vadd.f32 %v1416_v50, %v1701_v35  ;;  %v394_v56 = vpop.f32.mrf.mxu0 }
  0xe2   : > { %v1724_v51 = vmax.f32 %v400_v48, 0.0  ;;  %v474_v53 = vpop.f32.mrf.mxu1  ;;  %v395_v57 = vadd.f32 %v1701_v35, %v394_v56 }
  0xe3   : > { %v1731_v54 = vmax.f32 %v480_v52, 0.0  ;;  %v475_v55 = vadd.f32 %v1701_v35, %v474_v53  ;;  %v1395_v59 = vpop.f32.mrf.mxu0 }
  0xe4   : > { %607 = vrot.lane.b32.xlu0 %v1714_v45, %s1546_s10  ;;  %v1749_v60 = vmax.f32 %v395_v57, 0.0  ;;  %v1419_v62 = vpop.f32.mrf.mxu1  ;;  %v410_v63 = vadd.f32 %v1395_v59, %v1701_v35 }
  0xe5   : > { %946 = vrot.lane.b32.xlu1 %v1705_v41, %s1547_s11  ;;  %v1743_v58 = vmax.f32 %v475_v55, 0.0  ;;  %v404_v61 = vpop.f32.mrf.mxu0  ;;  %v490_v4 = vadd.f32 %v1419_v62, %v1701_v35 }
  0xe6   : > { %v405_v0 = vadd.f32 %v1701_v35, %v404_v61  ;;  %v484_v1 = vpop.f32.mrf.mxu1  ;;  %v1761_v2 = vmax.f32 %v410_v63, 0.0 }
  0xe7   : > { %v485_v5 = vadd.f32 %v1701_v35, %v484_v1  ;;  %v1771_v6 = vmax.f32 %v490_v4, 0.0  ;;  %v1398_v8 = vpop.f32.mrf.mxu0 }
  0xe8   : > { %639 = vrot.lane.b32.xlu0 %v1722_v49, %s1546_s10  ;;  %v1763_v3 = vmax.f32 %v405_v0, 0.0  ;;  %v1422_v10 = vpop.f32.mrf.mxu1  ;;  %v420_v11 = vadd.f32 %v1398_v8, %v1701_v35 }
  0xe9   : > { %978 = vrot.lane.b32.xlu1 %v1707_v42, %s1547_s11  ;;  %v1773_v7 = vmax.f32 %v485_v5, 0.0  ;;  %v414_v9 = vpop.f32.mrf.mxu0  ;;  %v500_v16 = vadd.f32 %v1422_v10, %v1701_v35 }
  0xea   : > { %v415_v12 = vadd.f32 %v1701_v35, %v414_v9  ;;  %v494_v13 = vpop.f32.mrf.mxu1  ;;  %v1789_v14 = vmax.f32 %v420_v11, 0.0 }
  0xeb   : > { %v495_v17 = vadd.f32 %v1701_v35, %v494_v13  ;;  %v1799_v18 = vmax.f32 %v500_v16, 0.0  ;;  %v1401_v20 = vpop.f32.mrf.mxu0 }
  0xec   : > { %944 = vrot.lane.b32.xlu0 %v1714_v45, %s1547_s11  ;;  %v1791_v15 = vmax.f32 %v415_v12, 0.0  ;;  %v1425_v22 = vpop.f32.mrf.mxu1  ;;  %v430_v23 = vadd.f32 %v1401_v20, %v1701_v35 }
  0xed   : > { %613 = vrot.lane.b32.xlu1 %v1724_v51, %s1546_s10  ;;  %v1801_v19 = vmax.f32 %v495_v17, 0.0  ;;  %v424_v21 = vpop.f32.mrf.mxu0  ;;  %v510_v28 = vadd.f32 %v1425_v22, %v1701_v35 }
  0xee   : > { %v425_v24 = vadd.f32 %v1701_v35, %v424_v21  ;;  %v504_v25 = vpop.f32.mrf.mxu1  ;;  %v1817_v26 = vmax.f32 %v430_v23, 0.0 }
  0xef   : > { %v505_v29 = vadd.f32 %v1701_v35, %v504_v25  ;;  %v1827_v30 = vmax.f32 %v510_v28, 0.0  ;;  %v1404_v32 = vpop.f32.mrf.mxu0 }
  0xf0   : > { %976 = vrot.lane.b32.xlu0 %v1722_v49, %s1547_s11  ;;  %v1819_v27 = vmax.f32 %v425_v24, 0.0  ;;  %v1428_v34 = vpop.f32.mrf.mxu1  ;;  %v440_v36 = vadd.f32 %v1404_v32, %v1701_v35 }
  0xf1   : > { %645 = vrot.lane.b32.xlu1 %v1731_v54, %s1546_s10  ;;  %2348 = vst [vmem:[#allocation5_spill] sm:$0xff] %v1827_v30  ;;  %v1829_v31 = vmax.f32 %v505_v29, 0.0  ;;  %v434_v33 = vpop.f32.mrf.mxu0  ;;  %v520_v43 = vadd.f32 %v1428_v34, %v1701_v35 }
  0xf2   : > { %v435_v37 = vadd.f32 %v1701_v35, %v434_v33  ;;  %v514_v38 = vpop.f32.mrf.mxu1  ;;  %v1845_v39 = vmax.f32 %v440_v36, 0.0 }
  0xf3   : > { %2349 = vst [vmem:[#allocation6_spill] sm:$0xff] %v1829_v31  ;;  %v515_v44 = vadd.f32 %v1701_v35, %v514_v38  ;;  %v1407_v46 = vpop.f32.mrf.mxu0  ;;  %v1855_v47 = vmax.f32 %v520_v43, 0.0 }
  0xf4   : > { %643 = vrot.lane.b32.xlu0 %v1743_v58, %s1546_s10  ;;  %v1847_v40 = vmax.f32 %v435_v37, 0.0  ;;  %v1431_v52 = vpop.f32.mrf.mxu1  ;;  %v450_v53 = vadd.f32 %v1407_v46, %v1701_v35 }
  0xf5   : > { %950 = vrot.lane.b32.xlu1 %v1724_v51, %s1547_s11  ;;  %2350 = vst [vmem:[#allocation7_spill] sm:$0xff] %v1855_v47  ;;  %v1857_v48 = vmax.f32 %v515_v44, 0.0  ;;  %v444_v50 = vpop.f32.mrf.mxu0  ;;  %v530_v61 = vadd.f32 %v1431_v52, %v1701_v35 }
  0xf6   : > { %v445_v55 = vadd.f32 %v1701_v35, %v444_v50  ;;  %v524_v56 = vpop.f32.mrf.mxu1  ;;  %v1869_v57 = vmax.f32 %v450_v53, 0.0 }
  0xf7   : > { %2351 = vst [vmem:[#allocation8_spill] sm:$0xff] %v1857_v48  ;;  %v525_v62 = vadd.f32 %v1701_v35, %v524_v56  ;;  %v1410_v63 = vpop.f32.mrf.mxu0  ;;  %v1879_v0 = vmax.f32 %v530_v61, 0.0 }
  0xf8   : > { %948 = vrot.lane.b32.xlu0 %v1749_v60, %s1547_s11  ;;  %2352 = vst [vmem:[#allocation9_spill] sm:$0xff] %v1869_v57  ;;  %v1871_v59 = vmax.f32 %v445_v55, 0.0  ;;  %v1434_v5 = vpop.f32.mrf.mxu1  ;;  %v460_v8 = vadd.f32 %v1410_v63, %v1701_v35 }
  0xf9   : > { %982 = vrot.lane.b32.xlu1 %v1731_v54, %s1547_s11  ;;  %2353 = vst [vmem:[#allocation10_spill] sm:$0xff] %v1879_v0  ;;  %v1881_v1 = vmax.f32 %v525_v62, 0.0  ;;  %v454_v4 = vpop.f32.mrf.mxu0  ;;  %v540_v13 = vadd.f32 %v1434_v5, %v1701_v35 }
  0xfa   : > { %v455_v9 = vadd.f32 %v1701_v35, %v454_v4  ;;  %v534_v10 = vpop.f32.mrf.mxu1  ;;  %v1893_v11 = vmax.f32 %v460_v8, 0.0 }
  0xfb   : > { %2354 = vst [vmem:[#allocation11_spill] sm:$0xff] %v1881_v1  ;;  %v535_v16 = vadd.f32 %v1701_v35, %v534_v10  ;;  %v1903_v17 = vmax.f32 %v540_v13, 0.0 }
  0xfc   : > { %980 = vrot.lane.b32.xlu0 %v1743_v58, %s1547_s11  ;;  %v1895_v12 = vmax.f32 %v455_v9, 0.0 }
  0xfd   : > { %611 = vrot.lane.b32.xlu1 %v1749_v60, %s1546_s10  ;;  %v1905_v20 = vmax.f32 %v535_v16, 0.0 }
 0x100   : > { %615 = vrot.lane.b32.xlu0 %v1763_v3, %s1546_s10 }
 0x101   : > { %617 = vrot.lane.b32.xlu1 %v1761_v2, %s1546_s10 }
 0x104   : > { %647 = vrot.lane.b32.xlu0 %v1773_v7, %s1546_s10 }
 0x105   : > { %649 = vrot.lane.b32.xlu1 %v1771_v6, %s1546_s10 }
 0x108   : > { %952 = vrot.lane.b32.xlu0 %v1763_v3, %s1547_s11 }
 0x109   : > { %954 = vrot.lane.b32.xlu1 %v1761_v2, %s1547_s11 }
 0x10c   : > { %984 = vrot.lane.b32.xlu0 %v1773_v7, %s1547_s11 }
 0x10d   : > { %986 = vrot.lane.b32.xlu1 %v1771_v6, %s1547_s11 }
 0x110   : > { %619 = vrot.lane.b32.xlu0 %v1791_v15, %s1546_s10 }
 0x111   : > { %621 = vrot.lane.b32.xlu1 %v1789_v14, %s1546_s10 }
 0x114   : > { %651 = vrot.lane.b32.xlu0 %v1801_v19, %s1546_s10 }
 0x115   : > { %653 = vrot.lane.b32.xlu1 %v1799_v18, %s1546_s10 }
 0x118   : > { %956 = vrot.lane.b32.xlu0 %v1791_v15, %s1547_s11 }
 0x119   : > { %958 = vrot.lane.b32.xlu1 %v1789_v14, %s1547_s11 }
 0x11c   : > { %988 = vrot.lane.b32.xlu0 %v1801_v19, %s1547_s11 }
 0x11d   : > { %990 = vrot.lane.b32.xlu1 %v1799_v18, %s1547_s11 }
 0x120   : > { %623 = vrot.lane.b32.xlu0 %v1819_v27, %s1546_s10 }
 0x121   : > { %625 = vrot.lane.b32.xlu1 %v1817_v26, %s1546_s10 }
 0x124   : > { %655 = vrot.lane.b32.xlu0 %v1829_v31, %s1546_s10 }
 0x125   : > { %657 = vrot.lane.b32.xlu1 %v1827_v30, %s1546_s10 }
 0x128   : > { %960 = vrot.lane.b32.xlu0 %v1819_v27, %s1547_s11 }
 0x129   : > { %962 = vrot.lane.b32.xlu1 %v1817_v26, %s1547_s11 }
 0x12c   : > { %992 = vrot.lane.b32.xlu0 %v1829_v31, %s1547_s11 }
 0x12d   : > { %994 = vrot.lane.b32.xlu1 %v1827_v30, %s1547_s11 }
 0x130   : > { %627 = vrot.lane.b32.xlu0 %v1847_v40, %s1546_s10 }
 0x131   : > { %629 = vrot.lane.b32.xlu1 %v1845_v39, %s1546_s10 }
 0x134   : > { %659 = vrot.lane.b32.xlu0 %v1857_v48, %s1546_s10 }
 0x135   : > { %661 = vrot.lane.b32.xlu1 %v1855_v47, %s1546_s10 }
 0x138   : > { %964 = vrot.lane.b32.xlu0 %v1847_v40, %s1547_s11 }
 0x139   : > { %966 = vrot.lane.b32.xlu1 %v1845_v39, %s1547_s11 }
 0x13c   : > { %631 = vrot.lane.b32.xlu0 %v1871_v59, %s1546_s10 }
 0x13d   : > { %633 = vrot.lane.b32.xlu1 %v1869_v57, %s1546_s10 }
 0x140   : > { %663 = vrot.lane.b32.xlu0 %v1881_v1, %s1546_s10 }
 0x141   : > { %665 = vrot.lane.b32.xlu1 %v1879_v0, %s1546_s10 }
 0x144   : > { %968 = vrot.lane.b32.xlu0 %v1871_v59, %s1547_s11 }
 0x145   : > { %970 = vrot.lane.b32.xlu1 %v1869_v57, %s1547_s11 }
 0x148   : > { %635 = vrot.lane.b32.xlu0 %v1895_v12, %s1546_s10 }
 0x149   : > { %637 = vrot.lane.b32.xlu1 %v1893_v11, %s1546_s10 }
 0x14c   : > { %667 = vrot.lane.b32.xlu0 %v1905_v20, %s1546_s10 }
 0x14d   : > { %669 = vrot.lane.b32.xlu1 %v1903_v17, %s1546_s10 }
 0x150   : > { %996 = vrot.lane.b32.xlu0 %v1857_v48, %s1547_s11 }
 0x151   : > { %974 = vrot.lane.b32.xlu1 %v1893_v11, %s1547_s11 }
 0x152   : > { %v610_v21 = vpop.permute.xlu0 %609 }
 0x153   : > { %v642_v35 = vpop.permute.xlu1 %641  ;;  %v704_v22 = vmax.f32 %v1705_v41, %v610_v21 }
 0x154   : > { %1000 = vrot.lane.b32.xlu0 %v1881_v1, %s1547_s11  ;;  %v720_v28 = vmax.f32 %v1707_v42, %v642_v35 }
 0x155   : > { %998 = vrot.lane.b32.xlu1 %v1855_v47, %s1547_s11  ;;  %v737_v29 = vsel %vm735_vm2, %v704_v22, -inf }
 0x156   : > { %v608_v24 = vpop.permute.xlu0 %607  ;;  %v809_v43 = vsel %vm735_vm2, %v720_v28, -inf }
 0x157   : > { %v1920_v23 = vpop.permute.xlu1 %946  ;;  %v703_v25 = vmax.f32 %v1714_v45, %v608_v24 }
 0x158   : > { %972 = vrot.lane.b32.xlu0 %v1895_v12, %s1547_s11 }
 0x159   : > { %1002 = vrot.lane.b32.xlu1 %v1879_v0, %s1547_s11  ;;  %v736_v32 = vsel %vm735_vm2, %v703_v25, -inf }
 0x15a   : > { %v738_v33 = vmax.f32 %v736_v32, %v737_v29  ;;  %v640_v36 = vpop.permute.xlu0 %639 }
 0x15b   : > { %v1930_v34 = vpop.permute.xlu1 %978  ;;  %v719_v37 = vmax.f32 %v1722_v49, %v640_v36 }
 0x15c   : > { %v739_v38 = vrot.slane %v738_v33, 4  ;;  %1004 = vrot.lane.b32.xlu0 %v1905_v20, %s1547_s11 }
 0x15d   : > { %1006 = vrot.lane.b32.xlu1 %v1903_v17, %s1547_s11  ;;  %v808_v44 = vsel %vm735_vm2, %v719_v37, -inf }
 0x15e   : > { %v740_v46 = vmax.f32 %v738_v33, %v739_v38  ;;  %v810_v50 = vmax.f32 %v808_v44, %v809_v43  ;;  %v1939_v53 = vpop.permute.xlu0 %944 }
 0x15f   : > { %v614_v52 = vpop.permute.xlu1 %613 }
 0x160   : > { %v741_v55 = vrot.slane %v740_v46, 2  ;;  %v811_v56 = vrot.slane %v810_v50, 4  ;;  %v706_v36 = vmax.f32 %v1724_v51, %v614_v52 }
 0x162   : > { %v812_v61 = vmax.f32 %v810_v50, %v811_v56  ;;  %v1941_v63 = vpop.permute.xlu0 %976  ;;  %v742_v4 = vmax.f32 %v740_v46, %v741_v55  ;;  %v746_v46 = vsel %vm735_vm2, %v706_v36, -inf }
 0x163   : > { %v646_v62 = vpop.permute.xlu1 %645 }
 0x164   : > { %v813_v5 = vrot.slane %v812_v61, 2  ;;  %v743_v8 = vrot.slane %v742_v4, 1  ;;  %v722_v9 = vmax.f32 %v1731_v54, %v646_v62 }
 0x166   : > { %v644_v13 = vpop.permute.xlu0 %643  ;;  %v744_v16 = vmax.f32 %v742_v4, %v743_v8  ;;  %v814_v35 = vmax.f32 %v812_v61, %v813_v5  ;;  %v818_v24 = vsel %vm735_vm2, %v722_v9, -inf }
 0x167   : > { %v1944_v10 = vpop.permute.xlu1 %950  ;;  %v721_v21 = vmax.f32 %v1743_v58, %v644_v13 }
 0x168   : > { %896 = vrot.lane.b32.xlu0 %v744_v16, %s1547_s11  ;;  %v815_v22 = vrot.slane %v814_v35, 1 }
 0x169   : > { %v817_v25 = vsel %vm735_vm2, %v721_v21, -inf }
 0x16a   : > { %v819_v28 = vmax.f32 %v817_v25, %v818_v24  ;;  %v1952_v32 = vpop.permute.xlu0 %948  ;;  %v816_v33 = vmax.f32 %v814_v35, %v815_v22 }
 0x16b   : > { %v1950_v29 = vpop.permute.xlu1 %982 }
 0x16c   : > { %912 = vrot.lane.b32.xlu0 %v816_v33, %s1547_s11  ;;  %v820_v37 = vrot.slane %v819_v28, 4 }
 0x16e   : > { %v1956_v43 = vpop.permute.xlu0 %980  ;;  %v821_v55 = vmax.f32 %v819_v28, %v820_v37 }
 0x16f   : > { %v612_v38 = vpop.permute.xlu1 %611 }
 0x170   : > { %v705_v44 = vmax.f32 %v1749_v60, %v612_v38  ;;  %1040 = vrot.lane.b32.xlu0 %v744_v16, %s1546_s10  ;;  %v822_v13 = vrot.slane %v821_v55, 2 }
 0x172   : > { %v745_v50 = vsel %vm735_vm2, %v705_v44, -inf  ;;  %v616_v62 = vpop.permute.xlu0 %615 }
 0x173   : > { %v747_v56 = vmax.f32 %v745_v50, %v746_v46  ;;  %v618_v61 = vpop.permute.xlu1 %617  ;;  %v707_v52 = vmax.f32 %v1763_v3, %v616_v62 }
 0x174   : > { %v708_v4 = vmax.f32 %v1761_v2, %v618_v61  ;;  %1056 = vrot.lane.b32.xlu0 %v816_v33, %s1546_s10  ;;  %v823_v61 = vmax.f32 %v821_v55, %v822_v13 }
 0x175   : > { %v748_v5 = vrot.slane %v747_v56, 4  ;;  %v754_v9 = vsel %vm735_vm2, %v707_v52, -inf }
 0x176   : > { %v755_v8 = vsel %vm735_vm2, %v708_v4, -inf  ;;  %v648_v22 = vpop.permute.xlu0 %647 }
 0x177   : > { %v749_v16 = vmax.f32 %v747_v56, %v748_v5  ;;  %v756_v35 = vmax.f32 %v754_v9, %v755_v8  ;;  %v650_v21 = vpop.permute.xlu1 %649  ;;  %v723_v25 = vmax.f32 %v1773_v7, %v648_v22  ;;  %v824_v22 = vrot.slane %v823_v61, 1 }
 0x178   : > { %v724_v24 = vmax.f32 %v1771_v6, %v650_v21 }
 0x179   : > { %v750_v28 = vrot.slane %v749_v16, 2  ;;  %v757_v36 = vrot.slane %v756_v35, 4  ;;  %v826_v38 = vsel %vm735_vm2, %v723_v25, -inf }
 0x17a   : > { %v827_v37 = vsel %vm735_vm2, %v724_v24, -inf  ;;  %v1973_v50 = vpop.permute.xlu0 %952 }
 0x17b   : > { %v758_v33 = vmax.f32 %v756_v35, %v757_v36  ;;  %v828_v44 = vmax.f32 %v826_v38, %v827_v37  ;;  %v1971_v46 = vpop.permute.xlu1 %954  ;;  %v751_v56 = vmax.f32 %v749_v16, %v750_v28  ;;  %v825_v38 = vmax.f32 %v823_v61, %v824_v22 }
 0x17d   : > { %v759_v62 = vrot.slane %v758_v33, 2  ;;  %v829_v4 = vrot.slane %v828_v44, 4  ;;  %v752_v52 = vrot.slane %v751_v56, 1 }
 0x17e   : > { %v1977_v9 = vpop.permute.xlu0 %984 }
 0x17f   : > { %v830_v5 = vmax.f32 %v828_v44, %v829_v4  ;;  %v1975_v8 = vpop.permute.xlu1 %986  ;;  %v753_v21 = vmax.f32 %v751_v56, %v752_v52  ;;  %v760_v24 = vmax.f32 %v758_v33, %v759_v62 }
 0x180   : > { %2355 = vst [vmem:[#allocation12_spill] sm:$0xff] %v1975_v8 }
 0x181   : > { %v831_v25 = vrot.slane %v830_v5, 2  ;;  %898 = vrot.lane.b32.xlu1 %v753_v21, %s1547_s11  ;;  %v761_v35 = vrot.slane %v760_v24, 1 }
 0x182   : > { %v620_v37 = vpop.permute.xlu0 %619 }
 0x183   : > { %v622_v36 = vpop.permute.xlu1 %621  ;;  %v762_v16 = vmax.f32 %v760_v24, %v761_v35  ;;  %v832_v55 = vmax.f32 %v830_v5, %v831_v25  ;;  %v709_v28 = vmax.f32 %v1791_v15, %v620_v37 }
 0x184   : > { %v710_v13 = vmax.f32 %v1789_v14, %v622_v36 }
 0x185   : > { %914 = vrot.lane.b32.xlu1 %v825_v38, %s1547_s11  ;;  %900 = vrot.lane.b32.xlu0 %v762_v16, %s1547_s11  ;;  %v833_v44 = vrot.slane %v832_v55, 1  ;;  %v763_v56 = vsel %vm735_vm2, %v709_v28, -inf }
 0x186   : > { %v764_v33 = vsel %vm735_vm2, %v710_v13, -inf  ;;  %v652_v52 = vpop.permute.xlu0 %651 }
 0x187   : > { %v765_v62 = vmax.f32 %v763_v56, %v764_v33  ;;  %v654_v4 = vpop.permute.xlu1 %653  ;;  %v834_v8 = vmax.f32 %v832_v55, %v833_v44  ;;  %v725_v5 = vmax.f32 %v1801_v19, %v652_v52 }
 0x188   : > { %v726_v61 = vmax.f32 %v1799_v18, %v654_v4 }
 0x189   : > { %v766_v22 = vrot.slane %v765_v62, 4  ;;  %1042 = vrot.lane.b32.xlu1 %v753_v21, %s1546_s10  ;;  %916 = vrot.lane.b32.xlu0 %v834_v8, %s1547_s11  ;;  %v835_v25 = vsel %vm735_vm2, %v725_v5, -inf }
 0x18a   : > { %v836_v24 = vsel %vm735_vm2, %v726_v61, -inf  ;;  %v1994_v13 = vpop.permute.xlu0 %956 }
 0x18b   : > { %v767_v35 = vmax.f32 %v765_v62, %v766_v22  ;;  %v837_v36 = vmax.f32 %v835_v25, %v836_v24  ;;  %v1992_v37 = vpop.permute.xlu1 %958 }
 0x18d   : > { %v768_v55 = vrot.slane %v767_v35, 2  ;;  %v838_v28 = vrot.slane %v837_v36, 4  ;;  %1058 = vrot.lane.b32.xlu1 %v825_v38, %s1546_s10  ;;  %1044 = vrot.lane.b32.xlu0 %v762_v16, %s1546_s10 }
 0x18e   : > { %v2000_v33 = vpop.permute.xlu0 %988 }
 0x18f   : > { %v839_v44 = vmax.f32 %v837_v36, %v838_v28  ;;  %v1998_v21 = vpop.permute.xlu1 %990  ;;  %2356 = vst [vmem:[#allocation13_spill] sm:$0xff] %v2000_v33  ;;  %v769_v56 = vmax.f32 %v767_v35, %v768_v55 }
 0x191   : > { %v840_v4 = vrot.slane %v839_v44, 2  ;;  %1060 = vrot.lane.b32.xlu0 %v834_v8, %s1546_s10  ;;  %v770_v62 = vrot.slane %v769_v56, 1 }
 0x192   : > { %v624_v61 = vpop.permute.xlu0 %623 }
 0x193   : > { %v626_v52 = vpop.permute.xlu1 %625  ;;  %v771_v5 = vmax.f32 %v769_v56, %v770_v62  ;;  %v841_v22 = vmax.f32 %v839_v44, %v840_v4  ;;  %v711_v38 = vmax.f32 %v1819_v27, %v624_v61 }
 0x194   : > { %v712_v24 = vmax.f32 %v1817_v26, %v626_v52 }
 0x195   : > { %902 = vrot.lane.b32.xlu1 %v771_v5, %s1547_s11  ;;  %v842_v16 = vrot.slane %v841_v22, 1  ;;  %v772_v36 = vsel %vm735_vm2, %v711_v38, -inf }
 0x196   : > { %v773_v25 = vsel %vm735_vm2, %v712_v24, -inf  ;;  %v656_v28 = vpop.permute.xlu0 %655 }
 0x197   : > { %v774_v35 = vmax.f32 %v772_v36, %v773_v25  ;;  %v658_v55 = vpop.permute.xlu1 %657  ;;  %v843_v8 = vmax.f32 %v841_v22, %v842_v16  ;;  %v727_v56 = vmax.f32 %v1829_v31, %v656_v28 }
 0x198   : > { %v728_v33 = vmax.f32 %v1827_v30, %v658_v55 }
 0x199   : > { %v775_v44 = vrot.slane %v774_v35, 4  ;;  %918 = vrot.lane.b32.xlu1 %v843_v8, %s1547_s11  ;;  %v844_v62 = vsel %vm735_vm2, %v727_v56, -inf }
 0x19a   : > { %v845_v4 = vsel %vm735_vm2, %v728_v33, -inf  ;;  %v2015_v38 = vpop.permute.xlu0 %960 }
 0x19b   : > { %v776_v52 = vmax.f32 %v774_v35, %v775_v44  ;;  %v846_v61 = vmax.f32 %v844_v62, %v845_v4  ;;  %v2013_v24 = vpop.permute.xlu1 %962 }
 0x19d   : > { %v777_v25 = vrot.slane %v776_v52, 2  ;;  %v847_v36 = vrot.slane %v846_v61, 4  ;;  %1046 = vrot.lane.b32.xlu1 %v771_v5, %s1546_s10 }
 0x19e   : > { %v2020_v55 = vpop.permute.xlu0 %992 }
 0x19f   : > { %v848_v22 = vmax.f32 %v846_v61, %v847_v36  ;;  %v2018_v16 = vpop.permute.xlu1 %994  ;;  %2358 = vst [vmem:[#allocation15_spill] sm:$0xff] %v2020_v55  ;;  %v778_v28 = vmax.f32 %v776_v52, %v777_v25 }
 0x1a0   : > { %2357 = vst [vmem:[#allocation14_spill] sm:$0xff] %v2018_v16 }
 0x1a1   : > { %v849_v30 = vrot.slane %v848_v22, 2  ;;  %1062 = vrot.lane.b32.xlu1 %v843_v8, %s1546_s10  ;;  %v779_v33 = vrot.slane %v778_v28, 1 }
 0x1a2   : > { %v628_v56 = vpop.permute.xlu0 %627 }
 0x1a3   : > { %v630_v35 = vpop.permute.xlu1 %629  ;;  %v780_v44 = vmax.f32 %v778_v28, %v779_v33  ;;  %v850_v4 = vmax.f32 %v848_v22, %v849_v30  ;;  %v713_v31 = vmax.f32 %v1847_v40, %v628_v56 }
 0x1a4   : > { %v714_v62 = vmax.f32 %v1845_v39, %v630_v35 }
 0x1a5   : > { %904 = vrot.lane.b32.xlu0 %v780_v44, %s1547_s11  ;;  %v851_v5 = vrot.slane %v850_v4, 1  ;;  %v781_v36 = vsel %vm735_vm2, %v713_v31, -inf }
 0x1a6   : > { %v782_v61 = vsel %vm735_vm2, %v714_v62, -inf  ;;  %v660_v16 = vpop.permute.xlu0 %659 }
 0x1a7   : > { %v783_v52 = vmax.f32 %v781_v36, %v782_v61  ;;  %v662_v25 = vpop.permute.xlu1 %661  ;;  %v852_v8 = vmax.f32 %v850_v4, %v851_v5  ;;  %v729_v28 = vmax.f32 %v1857_v48, %v660_v16 }
 0x1a8   : > { %v730_v55 = vmax.f32 %v1855_v47, %v662_v25 }
 0x1a9   : > { %v784_v30 = vrot.slane %v783_v52, 4  ;;  %920 = vrot.lane.b32.xlu0 %v852_v8, %s1547_s11  ;;  %v853_v33 = vsel %vm735_vm2, %v729_v28, -inf }
 0x1aa   : > { %v854_v22 = vsel %vm735_vm2, %v730_v55, -inf  ;;  %v2035_v31 = vpop.permute.xlu0 %964 }
 0x1ab   : > { %v785_v35 = vmax.f32 %v783_v52, %v784_v30  ;;  %v855_v56 = vmax.f32 %v853_v33, %v854_v22  ;;  %v2033_v62 = vpop.permute.xlu1 %966  ;;  %2359 = vst [vmem:[#allocation16_spill] sm:$0xff] %v2035_v31 }
 0x1ad   : > { %v786_v61 = vrot.slane %v785_v35, 2  ;;  %v856_v36 = vrot.slane %v855_v56, 4  ;;  %1048 = vrot.lane.b32.xlu0 %v780_v44, %s1546_s10 }
 0x1ae   : > { %v632_v16 = vpop.permute.xlu0 %631 }
 0x1af   : > { %v857_v4 = vmax.f32 %v855_v56, %v856_v36  ;;  %v634_v5 = vpop.permute.xlu1 %633  ;;  %v787_v25 = vmax.f32 %v785_v35, %v786_v61  ;;  %v715_v55 = vmax.f32 %v1871_v59, %v632_v16 }
 0x1b0   : > { %v716_v47 = vmax.f32 %v1869_v57, %v634_v5 }
 0x1b1   : > { %v858_v48 = vrot.slane %v857_v4, 2  ;;  %1064 = vrot.lane.b32.xlu0 %v852_v8, %s1546_s10  ;;  %v788_v52 = vrot.slane %v787_v25, 1  ;;  %v790_v30 = vsel %vm735_vm2, %v715_v55, -inf }
 0x1b2   : > { %v791_v28 = vsel %vm735_vm2, %v716_v47, -inf  ;;  %v664_v31 = vpop.permute.xlu0 %663 }
 0x1b3   : > { %v792_v22 = vmax.f32 %v790_v30, %v791_v28  ;;  %v666_v33 = vpop.permute.xlu1 %665  ;;  %v789_v44 = vmax.f32 %v787_v25, %v788_v52  ;;  %v859_v56 = vmax.f32 %v857_v4, %v858_v48  ;;  %v731_v35 = vmax.f32 %v1881_v1, %v664_v31 }
 0x1b4   : > { %v732_v36 = vmax.f32 %v1879_v0, %v666_v33 }
 0x1b5   : > { %v793_v61 = vrot.slane %v792_v22, 4  ;;  %906 = vrot.lane.b32.xlu1 %v789_v44, %s1547_s11  ;;  %v860_v5 = vrot.slane %v859_v56, 1  ;;  %v862_v16 = vsel %vm735_vm2, %v731_v35, -inf }
 0x1b6   : > { %v863_v8 = vsel %vm735_vm2, %v732_v36, -inf  ;;  %v2050_v28 = vpop.permute.xlu0 %968 }
 0x1b7   : > { %v794_v47 = vmax.f32 %v792_v22, %v793_v61  ;;  %v864_v57 = vmax.f32 %v862_v16, %v863_v8  ;;  %v2048_v55 = vpop.permute.xlu1 %970  ;;  %v861_v25 = vmax.f32 %v859_v56, %v860_v5 }
 0x1b9   : > { %v795_v48 = vrot.slane %v794_v47, 2  ;;  %v865_v4 = vrot.slane %v864_v57, 4  ;;  %922 = vrot.lane.b32.xlu1 %v861_v25, %s1547_s11 }
 0x1ba   : > { %v636_v30 = vpop.permute.xlu0 %635 }
 0x1bb   : > { %v866_v31 = vmax.f32 %v864_v57, %v865_v4  ;;  %v638_v52 = vpop.permute.xlu1 %637  ;;  %v796_v33 = vmax.f32 %v794_v47, %v795_v48  ;;  %v717_v36 = vmax.f32 %v1895_v12, %v636_v30 }
 0x1bc   : > { %v718_v0 = vmax.f32 %v1893_v11, %v638_v52 }
 0x1bd   : > { %v867_v35 = vrot.slane %v866_v31, 2  ;;  %1050 = vrot.lane.b32.xlu1 %v789_v44, %s1546_s10  ;;  %v797_v22 = vrot.slane %v796_v33, 1  ;;  %v799_v56 = vsel %vm735_vm2, %v717_v36, -inf }
 0x1be   : > { %v800_v61 = vsel %vm735_vm2, %v718_v0, -inf  ;;  %v668_v16 = vpop.permute.xlu0 %667 }
 0x1bf   : > { %v801_v5 = vmax.f32 %v799_v56, %v800_v61  ;;  %v670_v8 = vpop.permute.xlu1 %669  ;;  %v798_v1 = vmax.f32 %v796_v33, %v797_v22  ;;  %v868_v57 = vmax.f32 %v866_v31, %v867_v35  ;;  %v733_v47 = vmax.f32 %v1905_v20, %v668_v16 }
 0x1c0   : > { %v734_v4 = vmax.f32 %v1903_v17, %v670_v8 }
 0x1c1   : > { %v802_v48 = vrot.slane %v801_v5, 4  ;;  %1066 = vrot.lane.b32.xlu1 %v861_v25, %s1546_s10  ;;  %908 = vrot.lane.b32.xlu0 %v798_v1, %s1547_s11  ;;  %v869_v44 = vrot.slane %v868_v57, 1  ;;  %v871_v0 = vsel %vm735_vm2, %v733_v47, -inf }
 0x1c2   : > { %v872_v52 = vsel %vm735_vm2, %v734_v4, -inf  ;;  %v2064_v31 = vpop.permute.xlu0 %996 }
 0x1c3   : > { %v803_v30 = vmax.f32 %v801_v5, %v802_v48  ;;  %v873_v36 = vmax.f32 %v871_v0, %v872_v52  ;;  %v870_v61 = vmax.f32 %v868_v57, %v869_v44  ;;  %v2080_v52 = vpop.permute.xlu1 %974 }
 0x1c5   : > { %v804_v56 = vrot.slane %v803_v30, 2  ;;  %v874_v33 = vrot.slane %v873_v36, 4  ;;  %924 = vrot.lane.b32.xlu0 %v870_v61, %s1547_s11 }
 0x1c6   : > { %v2068_v16 = vpop.permute.xlu0 %1000 }
 0x1c7   : > { %v875_v35 = vmax.f32 %v873_v36, %v874_v33  ;;  %v805_v22 = vmax.f32 %v803_v30, %v804_v56 }
 0x1c9   : > { %v876_v8 = vrot.slane %v875_v35, 2  ;;  %1052 = vrot.lane.b32.xlu0 %v798_v1, %s1546_s10  ;;  %v806_v25 = vrot.slane %v805_v22, 1 }
 0x1ca   : > { %v2072_v48 = vpop.permute.xlu0 %972 }
 0x1cb   : > { %v807_v4 = vmax.f32 %v805_v22, %v806_v25  ;;  %v877_v5 = vmax.f32 %v875_v35, %v876_v8 }
 0x1cd   : > { %1068 = vrot.lane.b32.xlu0 %v870_v61, %s1546_s10  ;;  %910 = vrot.lane.b32.xlu1 %v807_v4, %s1547_s11  ;;  %v878_v57 = vrot.slane %v877_v5, 1  ;;  %v2088_v61 = vpop.permute.xlu1 %998 }
 0x1ce   : > { %v2076_v44 = vpop.permute.xlu0 %1004 }
 0x1cf   : > { %v879_v47 = vmax.f32 %v877_v5, %v878_v57 }
 0x1d1   : > { %926 = vrot.lane.b32.xlu1 %v879_v47, %s1547_s11 }
 0x1d5   : > { %1054 = vrot.lane.b32.xlu1 %v807_v4, %s1546_s10  ;;  %v2110_v4 = vpop.permute.xlu1 %1002 }
 0x1d9   : > { %1070 = vrot.lane.b32.xlu1 %v879_v47, %s1546_s10  ;;  %v2114_v5 = vpop.permute.xlu1 %1006 }
 0x1da   : > { %v897_v1 = vpop.permute.xlu0 %896 }
 0x1db   : > { %v1088_v30 = vsel %vm735_vm2, %v1714_v45, %v897_v1  ;;  %v1089_v36 = vsel %vm735_vm2, %v1705_v41, %v897_v1 }
 0x1dc   : > { %v1121_v56 = vsel %vm1120_vm3, %v1088_v30, %v1939_v53  ;;  %v1122_v33 = vsel %vm1120_vm3, %v1089_v36, %v1920_v23 }
 0x1de   : > { %v913_v0 = vpop.permute.xlu0 %912 }
 0x1df   : > { %v1104_v22 = vsel %vm735_vm2, %v1722_v49, %v913_v0  ;;  %v1105_v45 = vsel %vm735_vm2, %v1707_v42, %v913_v0 }
 0x1e0   : > { %v1137_v23 = vsel %vm1120_vm3, %v1104_v22, %v1941_v63  ;;  %v1138_v49 = vsel %vm1120_vm3, %v1105_v45, %v1930_v34 }
 0x1e2   : > { %v1041_v35 = vpop.permute.xlu0 %1040 }
 0x1e3   : > { %v1154_v8 = vsel %vm1153_vm4, %v1121_v56, %v1041_v35  ;;  %v1155_v41 = vsel %vm1153_vm4, %v1122_v33, %v1041_v35 }
 0x1e4   : > { %1186 = vst [vmem:[%s2100_s20] sm:$0xff] %v1154_v8  ;;  %1187 = vst [vmem:[%s2100_s20 + $0x8] sm:$0xff] %v1155_v41 }
 0x1e6   : > { %v1057_v53 = vpop.permute.xlu0 %1056 }
 0x1e7   : > { %v1170_v42 = vsel %vm1153_vm4, %v1137_v23, %v1057_v53  ;;  %v1171_v25 = vsel %vm1153_vm4, %v1138_v49, %v1057_v53 }
 0x1e8   : > { %1202 = vst [vmem:[%s2100_s20 + $0x80] sm:$0xff] %v1170_v42  ;;  %1203 = vst [vmem:[%s2100_s20 + $0x88] sm:$0xff] %v1171_v25 }
 0x1f3   : > { %v899_v57 = vpop.permute.xlu1 %898 }
 0x1f4   : > { %v1090_v63 = vsel %vm735_vm2, %v1749_v60, %v899_v57  ;;  %v1091_v34 = vsel %vm735_vm2, %v1724_v51, %v899_v57 }
 0x1f5   : > { %v1124_v36 = vsel %vm1120_vm3, %v1091_v34, %v1944_v10  ;;  %v1123_v33 = vsel %vm1120_vm3, %v1090_v63, %v1952_v32 }
 0x1f7   : > { %v915_v47 = vpop.permute.xlu1 %914  ;;  %v901_v1 = vpop.permute.xlu0 %900 }
 0x1f8   : > { %v1106_v0 = vsel %vm735_vm2, %v1743_v58, %v915_v47  ;;  %v1107_v30 = vsel %vm735_vm2, %v1731_v54, %v915_v47  ;;  %v1092_v60 = vsel %vm735_vm2, %v1763_v3, %v901_v1  ;;  %v1093_v51 = vsel %vm735_vm2, %v1761_v2, %v901_v1 }
 0x1f9   : > { %v1140_v54 = vsel %vm1120_vm3, %v1107_v30, %v1950_v29  ;;  %v1139_v10 = vsel %vm1120_vm3, %v1106_v0, %v1956_v43  ;;  %v1125_v45 = vsel %vm1120_vm3, %v1092_v60, %v1973_v50  ;;  %v1126_v8 = vsel %vm1120_vm3, %v1093_v51, %v1971_v46  ;;  %v2360_v50 = vld [vmem:[#allocation12_spill] sm:$0xff] }
 0x1fb   : > { %v1043_v56 = vpop.permute.xlu1 %1042  ;;  %v917_v35 = vpop.permute.xlu0 %916 }
 0x1fc   : > { %v1156_v22 = vsel %vm1153_vm4, %v1123_v33, %v1043_v56  ;;  %v1157_v58 = vsel %vm1153_vm4, %v1124_v36, %v1043_v56  ;;  %v1108_v3 = vsel %vm735_vm2, %v1773_v7, %v917_v35  ;;  %v1109_v2 = vsel %vm735_vm2, %v1771_v6, %v917_v35  ;;  %v2361_v56 = vld [vmem:[#allocation13_spill] sm:$0xff] }
 0x1fd   : > { %1188 = vst [vmem:[%s2100_s20 + $0x10] sm:$0xff] %v1156_v22  ;;  %1189 = vst [vmem:[%s2100_s20 + $0x18] sm:$0xff] %v1157_v58  ;;  %v1141_v6 = vsel %vm1120_vm3, %v1108_v3, %v1977_v9  ;;  %v1142_v46 = vsel %vm1120_vm3, %v1109_v2, %v2360_v50  ;;  %v2363_v3 = vld [vmem:[#allocation5_spill] sm:$0xff] }
 0x1ff   : > { %v1059_v32 = vpop.permute.xlu1 %1058  ;;  %v1045_v41 = vpop.permute.xlu0 %1044 }
 0x200   : > { %v1172_v29 = vsel %vm1153_vm4, %v1139_v10, %v1059_v32  ;;  %v1173_v43 = vsel %vm1153_vm4, %v1140_v54, %v1059_v32  ;;  %v1158_v23 = vsel %vm1153_vm4, %v1125_v45, %v1045_v41  ;;  %v1159_v7 = vsel %vm1153_vm4, %v1126_v8, %v1045_v41  ;;  %v2362_v54 = vld [vmem:[#allocation6_spill] sm:$0xff] }
 0x201   : > { %1204 = vst [vmem:[%s2100_s20 + $0x90] sm:$0xff] %v1172_v29  ;;  %1205 = vst [vmem:[%s2100_s20 + $0x98] sm:$0xff] %v1173_v43 }
 0x202   : > { %1190 = vst [vmem:[%s2100_s20 + $0x20] sm:$0xff] %v1158_v23  ;;  %1191 = vst [vmem:[%s2100_s20 + $0x28] sm:$0xff] %v1159_v7 }
 0x203   : > { %v1061_v49 = vpop.permute.xlu0 %1060 }
 0x204   : > { %v1174_v53 = vsel %vm1153_vm4, %v1141_v6, %v1061_v49  ;;  %v1175_v42 = vsel %vm1153_vm4, %v1142_v46, %v1061_v49  ;;  %v2366_v49 = vld [vmem:[#allocation16_spill] sm:$0xff] }
 0x205   : > { %1206 = vst [vmem:[%s2100_s20 + $0xa0] sm:$0xff] %v1174_v53  ;;  %1207 = vst [vmem:[%s2100_s20 + $0xa8] sm:$0xff] %v1175_v42  ;;  %v2367_v42 = vld [vmem:[#allocation8_spill] sm:$0xff] }
 0x207   : > { %v903_v25 = vpop.permute.xlu1 %902 }
 0x208   : > { %v1094_v47 = vsel %vm735_vm2, %v1791_v15, %v903_v25  ;;  %v1095_v9 = vsel %vm735_vm2, %v1789_v14, %v903_v25 }
 0x209   : > { %v1128_v1 = vsel %vm1120_vm3, %v1095_v9, %v1992_v37  ;;  %v1127_v34 = vsel %vm1120_vm3, %v1094_v47, %v1994_v13 }
 0x20b   : > { %v919_v57 = vpop.permute.xlu1 %918 }
 0x20c   : > { %v1110_v0 = vsel %vm735_vm2, %v1801_v19, %v919_v57  ;;  %v1111_v30 = vsel %vm735_vm2, %v1799_v18, %v919_v57  ;;  %v2368_v57 = vld [vmem:[#allocation7_spill] sm:$0xff] }
 0x20d   : > { %v1144_v14 = vsel %vm1120_vm3, %v1111_v30, %v1998_v21  ;;  %v1143_v33 = vsel %vm1120_vm3, %v1110_v0, %v2361_v56  ;;  %v2370_v56 = vld [vmem:[#allocation11_spill] sm:$0xff] }
 0x20f   : > { %v1047_v63 = vpop.permute.xlu1 %1046 }
 0x210   : > { %v1160_v15 = vsel %vm1153_vm4, %v1127_v34, %v1047_v63  ;;  %v1161_v36 = vsel %vm1153_vm4, %v1128_v1, %v1047_v63 }
 0x211   : > { %1192 = vst [vmem:[%s2100_s20 + $0x30] sm:$0xff] %v1160_v15  ;;  %1193 = vst [vmem:[%s2100_s20 + $0x38] sm:$0xff] %v1161_v36  ;;  %v2369_v36 = vld [vmem:[#allocation9_spill] sm:$0xff] }
 0x213   : > { %v1063_v37 = vpop.permute.xlu1 %1062 }
 0x214   : > { %v1176_v13 = vsel %vm1153_vm4, %v1143_v33, %v1063_v37  ;;  %v1177_v19 = vsel %vm1153_vm4, %v1144_v14, %v1063_v37 }
 0x215   : > { %1208 = vst [vmem:[%s2100_s20 + $0xb0] sm:$0xff] %v1176_v13  ;;  %1209 = vst [vmem:[%s2100_s20 + $0xb8] sm:$0xff] %v1177_v19  ;;  %v2371_v13 = vld [vmem:[#allocation10_spill] sm:$0xff] }
 0x217   : > { %v905_v18 = vpop.permute.xlu0 %904 }
 0x218   : > { %v1096_v60 = vsel %vm735_vm2, %v1819_v27, %v905_v18  ;;  %v1097_v21 = vsel %vm735_vm2, %v1817_v26, %v905_v18  ;;  %v2364_v26 = vld [vmem:[#allocation15_spill] sm:$0xff] }
 0x219   : > { %v1129_v51 = vsel %vm1120_vm3, %v1096_v60, %v2015_v38  ;;  %v1130_v22 = vsel %vm1120_vm3, %v1097_v21, %v2013_v24  ;;  %v2365_v38 = vld [vmem:[#allocation14_spill] sm:$0xff] }
 0x21b   : > { %v921_v35 = vpop.permute.xlu0 %920 }
 0x21c   : > { %v1112_v10 = vsel %vm735_vm2, %v2362_v54, %v921_v35  ;;  %v1113_v2 = vsel %vm735_vm2, %v2363_v3, %v921_v35 }
 0x21d   : > { %v1145_v45 = vsel %vm1120_vm3, %v1112_v10, %v2364_v26  ;;  %v1146_v8 = vsel %vm1120_vm3, %v1113_v2, %v2365_v38 }
 0x21f   : > { %v1049_v58 = vpop.permute.xlu0 %1048 }
 0x220   : > { %v1162_v27 = vsel %vm1153_vm4, %v1129_v51, %v1049_v58  ;;  %v1163_v32 = vsel %vm1153_vm4, %v1130_v22, %v1049_v58 }
 0x221   : > { %1194 = vst [vmem:[%s2100_s20 + $0x40] sm:$0xff] %v1162_v27  ;;  %1195 = vst [vmem:[%s2100_s20 + $0x48] sm:$0xff] %v1163_v32 }
 0x223   : > { %v1065_v24 = vpop.permute.xlu0 %1064 }
 0x224   : > { %v1178_v41 = vsel %vm1153_vm4, %v1145_v45, %v1065_v24  ;;  %v1179_v29 = vsel %vm1153_vm4, %v1146_v8, %v1065_v24 }
 0x225   : > { %1210 = vst [vmem:[%s2100_s20 + $0xc0] sm:$0xff] %v1178_v41  ;;  %1211 = vst [vmem:[%s2100_s20 + $0xc8] sm:$0xff] %v1179_v29 }
 0x227   : > { %v907_v43 = vpop.permute.xlu1 %906 }
 0x228   : > { %v1098_v7 = vsel %vm735_vm2, %v1847_v40, %v907_v43  ;;  %v1099_v6 = vsel %vm735_vm2, %v1845_v39, %v907_v43 }
 0x229   : > { %v1132_v50 = vsel %vm1120_vm3, %v1099_v6, %v2033_v62  ;;  %v1131_v53 = vsel %vm1120_vm3, %v1098_v7, %v2366_v49 }
 0x22b   : > { %v923_v23 = vpop.permute.xlu1 %922 }
 0x22c   : > { %v1114_v25 = vsel %vm735_vm2, %v2367_v42, %v923_v23  ;;  %v1115_v47 = vsel %vm735_vm2, %v2368_v57, %v923_v23 }
 0x22d   : > { %v1148_v39 = vsel %vm1120_vm3, %v1115_v47, %v2088_v61  ;;  %v1147_v1 = vsel %vm1120_vm3, %v1114_v25, %v2064_v31 }
 0x22f   : > { %v1051_v46 = vpop.permute.xlu1 %1050 }
 0x230   : > { %v1164_v40 = vsel %vm1153_vm4, %v1131_v53, %v1051_v46  ;;  %v1165_v9 = vsel %vm1153_vm4, %v1132_v50, %v1051_v46 }
 0x231   : > { %1196 = vst [vmem:[%s2100_s20 + $0x50] sm:$0xff] %v1164_v40  ;;  %1197 = vst [vmem:[%s2100_s20 + $0x58] sm:$0xff] %v1165_v9 }
 0x233   : > { %v1067_v62 = vpop.permute.xlu1 %1066  ;;  %v909_v63 = vpop.permute.xlu0 %908 }
 0x234   : > { %v1180_v34 = vsel %vm1153_vm4, %v1147_v1, %v1067_v62  ;;  %v1181_v0 = vsel %vm1153_vm4, %v1148_v39, %v1067_v62  ;;  %v1100_v15 = vsel %vm735_vm2, %v1871_v59, %v909_v63  ;;  %v1101_v61 = vsel %vm735_vm2, %v2369_v36, %v909_v63 }
 0x235   : > { %1212 = vst [vmem:[%s2100_s20 + $0xd0] sm:$0xff] %v1180_v34  ;;  %1213 = vst [vmem:[%s2100_s20 + $0xd8] sm:$0xff] %v1181_v0  ;;  %v1133_v31 = vsel %vm1120_vm3, %v1100_v15, %v2050_v28  ;;  %v1134_v14 = vsel %vm1120_vm3, %v1101_v61, %v2048_v55 }
 0x237   : > { %v925_v30 = vpop.permute.xlu0 %924 }
 0x238   : > { %v1116_v33 = vsel %vm735_vm2, %v2370_v56, %v925_v30  ;;  %v1117_v19 = vsel %vm735_vm2, %v2371_v13, %v925_v30 }
 0x239   : > { %v1149_v35 = vsel %vm1120_vm3, %v1116_v33, %v2068_v16  ;;  %v1150_v55 = vsel %vm1120_vm3, %v1117_v19, %v2110_v4 }
 0x23b   : > { %v1053_v37 = vpop.permute.xlu0 %1052 }
 0x23c   : > { %v1166_v59 = vsel %vm1153_vm4, %v1133_v31, %v1053_v37  ;;  %v1167_v18 = vsel %vm1153_vm4, %v1134_v14, %v1053_v37 }
 0x23d   : > { %1198 = vst [vmem:[%s2100_s20 + $0x60] sm:$0xff] %v1166_v59  ;;  %1199 = vst [vmem:[%s2100_s20 + $0x68] sm:$0xff] %v1167_v18 }
 0x23f   : > { %v911_v28 = vpop.permute.xlu1 %910  ;;  %v1069_v60 = vpop.permute.xlu0 %1068 }
 0x240   : > { %v1182_v21 = vsel %vm1153_vm4, %v1149_v35, %v1069_v60  ;;  %v1183_v51 = vsel %vm1153_vm4, %v1150_v55, %v1069_v60  ;;  %v1102_v58 = vsel %vm735_vm2, %v1895_v12, %v911_v28  ;;  %v1103_v54 = vsel %vm735_vm2, %v1893_v11, %v911_v28 }
 0x241   : > { %1214 = vst [vmem:[%s2100_s20 + $0xe0] sm:$0xff] %v1182_v21  ;;  %1215 = vst [vmem:[%s2100_s20 + $0xe8] sm:$0xff] %v1183_v51  ;;  %v1136_v16 = vsel %vm1120_vm3, %v1103_v54, %v2080_v52  ;;  %v1135_v10 = vsel %vm1120_vm3, %v1102_v58, %v2072_v48 }
 0x243   : > { %v927_v22 = vpop.permute.xlu1 %926 }
 0x244   : > { %v1118_v3 = vsel %vm735_vm2, %v1905_v20, %v927_v22  ;;  %v1119_v12 = vsel %vm735_vm2, %v1903_v17, %v927_v22 }
 0x245   : > { %v1152_v20 = vsel %vm1120_vm3, %v1119_v12, %v2114_v5  ;;  %v1151_v48 = vsel %vm1120_vm3, %v1118_v3, %v2076_v44 }
 0x247   : > { %v1055_v4 = vpop.permute.xlu1 %1054 }
 0x248   : > { %v1168_v11 = vsel %vm1153_vm4, %v1135_v10, %v1055_v4  ;;  %v1169_v52 = vsel %vm1153_vm4, %v1136_v16, %v1055_v4 }
 0x249   : > { %1200 = vst [vmem:[%s2100_s20 + $0x70] sm:$0xff] %v1168_v11  ;;  %1201 = vst [vmem:[%s2100_s20 + $0x78] sm:$0xff] %v1169_v52 }
 0x24b   : > { %v1071_v17 = vpop.permute.xlu1 %1070 }
 0x24c   : > { %v1184_v2 = vsel %vm1153_vm4, %v1151_v48, %v1071_v17  ;;  %v1185_v27 = vsel %vm1153_vm4, %v1152_v20, %v1071_v17 }
 0x24d   : > { %1216 = vst [vmem:[%s2100_s20 + $0xf0] sm:$0xff] %v1184_v2  ;;  %1217 = vst [vmem:[%s2100_s20 + $0xf8] sm:$0xff] %v1185_v27 }
 0x24e   : > { %1497 = shalt.err (!%p1494_p3)
}
 0x24f   : > { %s1498_s6 = scalar_lea.hbm %s2281_s16, 4096  ;;  %s1502_s9 = scalar_lea.hbm %s2338_s3, 8192 }
 0x250   : > { %p1499_p4 = scmp.ne.s32.totalorder %s2281_s16, %s1498_s6  ;;  %p1503_p9 = scmp.lt.s32.totalorder %s2281_s16, %s2338_s3 }
 0x251   : > { %p1504_p10 = scmp.lt.s32.totalorder %s1502_s9, %s1498_s6 }
 0x252   : > { %p1500_p7 = pnand %p1499_p4, %p1609_p5 }
 0x253   : > { %p1505_p11 = por %p1504_p10, %p1503_p9 }
 0x254   : > { %p1501_p8 = pneg %p1500_p7 }
 0x256   : > { %p1506_p12 = pnand %p1505_p11, %p1501_p8 }
 0x258   : > { %1509 = shalt.err (!%p1506_p12)
}
 0x259   : > { %s1549_s17 = smov 128   ;;  %s1550_s19 = smov 8  }
 0x25a   : > { %1441 = dma.vmem_to_hbm [thread:$0]  (%p1609_p5), %s2283_s25, 4096, %s2281_s16, %s2295_s28, %s1549_s17, %s1549_s17, %s1550_s19  }
 0x25b PF: > { %p1447_p13 = scmp.ge.s32.totalorder %s1544_s15, 2  ;;  %s1248_s20 = sand.u32 1, %s1532_s12  }
 0x25c   : > { %s1249_s24 = scalar_lea.sflag [#allocation3], %s1248_s20 }
 0x25d   : > { %p1444_p0 = pnand %p1447_p13, %p1613_p6 }
 0x25f   : > { %p1445_p1 = pneg %p1444_p0 }
 0x261   : > { %1527 = dma.done.wait (%p1445_p1), %s1249_s24, 4096  }
 0x262   : > { %1529 = vsyncadd (%p1445_p1), %s1249_s24, 4294963200  ;;  %p13_p2 = scmp.ge.s32.totalorder %s1596_s18, 4   ;;  %s2372_s12 = smov %s1536_s13 }
 0x263   : > { %s2373_s13 = smov %s1540_s14  ;;  %s2374_s14 = smov %s1607_s21 }
 0x264   : > { %s2375_s15 = smov %s1596_s18  ;;  %15 = sbr.rel (!%p13_p2) target bundleno = 3 (0x3), region = 67 }
 0x269   :  { %1254 = vsyncpa [#allocation3], 1 }
 0x26a   :  { %1256 = vsyncpa [#allocation3 + $0x1], 1 }

</bundles_post_ra>
